<compile_context>
chip_gen: v6e
topology: v6e:2x2x1
jax: 0.10.0
libtpu: 0.0.40
codegen_flags: <defaults>
</compile_context>

<pallas_src>
import functools

import jax
import jax.numpy as jnp
from jax.experimental import pallas as pl
from jax.experimental.pallas import tpu as pltpu

_LANE = 128      # last-dim (lane) tile width
_SUBLANE = 8     # second-to-last-dim (sublane) tile width


def _round_up(x, m):
    return (x + m - 1) // m * m


def _fused_mlp_kernel(num_layers, scales_ref, x_ref, *rest):
    """Entire weight-normalized MLP (Linear -> ReLU per layer), fused in VMEM.

    scales_ref : SMEM (num_layers,) f32  -- precomputed g / ||v||_F per layer
    x_ref      : VMEM (bm, d0_pad)       -- one batch tile of the input
    rest       : v_0, b_0, ..., v_{L-1}, b_{L-1}, o_ref   (all VMEM)
                 v_l: (din_pad_l, dout_pad_l), b_l: (1, dout_pad_l)
    """
    o_ref = rest[-1]
    vb_refs = rest[:-1]

    h = x_ref[...]                                       # (bm, d0_pad) f32
    for l in range(num_layers):                          # static unroll
        v = vb_refs[2 * l][...]
        b = vb_refs[2 * l + 1][...]
        # y = (x @ v) * scale + b : scale the small (bm, dout) result instead
        # of the full weight -> one MXU matmul + a tiny VPU epilogue per layer.
        y = jnp.dot(h, v, preferred_element_type=jnp.float32)
        y = y * scales_ref[l] + b
        h = jnp.maximum(y, 0.0)                          # ReLU
    o_ref[...] = h.astype(o_ref.dtype)


def nonlinear_layer_forward(x, params, *, block_m=128):
    """Forward pass of NonLinearLayer via a single fused pallas_call."""
    batch, d_in = x.shape
    num_layers = len(params)
    dims = [params[0][0].shape[0]] + [p[0].shape[1] for p in params]
    assert d_in == dims[0], "input feature dim mismatch"

    dims_pad = [_round_up(d, _LANE) for d in dims]       # lane-dense features
    bm = min(block_m, _round_up(batch, _SUBLANE))        # batch tile
    batch_pad = _round_up(batch, bm)

    # ---- host-side prep (cheap one-off XLA ops, hoisted out of the kernel) ----
    # weight_norm(dim=None): scalar scale = g / ||v||_F, computed on unpadded v.
    scales = jnp.stack(
        [(g.reshape(()) / jnp.linalg.norm(v)).astype(jnp.float32)
         for v, g, b in params])

    x_pad = jnp.zeros((batch_pad, dims_pad[0]), jnp.float32)
    x_pad = x_pad.at[:batch, :dims[0]].set(x.astype(jnp.float32))

    flat_inputs = [scales, x_pad]
    in_specs = [
        pl.BlockSpec(memory_space=pltpu.MemorySpace.SMEM),      # scales (SMEM)
        pl.BlockSpec((bm, dims_pad[0]), lambda i: (i, 0)),      # x batch tile
    ]
    for l, (v, g, b) in enumerate(params):
        din_p, dout_p = dims_pad[l], dims_pad[l + 1]
        v_pad = jnp.zeros((din_p, dout_p), jnp.float32)
        v_pad = v_pad.at[:v.shape[0], :v.shape[1]].set(v)
        bias_pad = jnp.zeros((1, dout_p), jnp.float32)
        bias_pad = bias_pad.at[:, :b.shape[-1]].set(b.reshape(1, -1))
        flat_inputs += [v_pad, bias_pad]
        in_specs += [
            pl.BlockSpec((din_p, dout_p), lambda i: (0, 0)),    # weight (resident)
            pl.BlockSpec((1, dout_p), lambda i: (0, 0)),        # bias   (resident)
        ]

    out = pl.pallas_call(
        functools.partial(_fused_mlp_kernel, num_layers),
        out_shape=jax.ShapeDtypeStruct((batch_pad, dims_pad[-1]), jnp.float32),
        grid=(batch_pad // bm,),
        in_specs=in_specs,
        out_specs=pl.BlockSpec((bm, dims_pad[-1]), lambda i: (i, 0)),
        compiler_params=pltpu.CompilerParams(
            dimension_semantics=("parallel",),   # batch tiles are independent
        ),
    )(*flat_inputs)

    return out[:batch, :dims[-1]]


def init_nonlinear_layer(key, dims):
    """Deterministic parameter init matching weight_norm(nn.Linear) shapes.

    Returns a list of (v, g, b) per layer:
      v: (in_dim, out_dim) float32   (torch stores (out_dim, in_dim); transposed here)
      g: (1, 1) float32              (weight_norm dim=None -> scalar g, init = ||v||)
      b: (1, out_dim) float32
    """
    params = []
    for i in range(len(dims) - 1):
        in_dim, out_dim = dims[i], dims[i + 1]
        key, kv, kb = jax.random.split(key, 3)
        bound = 1.0 / jnp.sqrt(in_dim)
        v = jax.random.uniform(kv, (in_dim, out_dim), jnp.float32, -bound, bound)
        g = jnp.linalg.norm(v).reshape(1, 1).astype(jnp.float32)
        b = jax.random.uniform(kb, (1, out_dim), jnp.float32, -bound, bound)
        params.append((v, g, b))
    return params


if __name__ == "__main__":
    dims = [16, 32, 8]          # Linear(16,32)+ReLU, Linear(32,8)+ReLU
    batch = 8

    key = jax.random.PRNGKey(0)
    key, kx = jax.random.split(key)
    x = jax.random.normal(kx, (batch, dims[0]), jnp.float32)

    params = init_nonlinear_layer(key, dims)

    out = nonlinear_layer_forward(x, params)
    out = jax.block_until_ready(out)

    # sanity: reference in plain JAX (matches torch weight_norm(dim=None) semantics)
    ref = x
    for v, g, b in params:
        w = v * (g[0, 0] / jnp.linalg.norm(v))
        ref = jnp.maximum(ref @ w + b, 0.0)

    assert out.shape == (batch, dims[-1])
    assert jnp.allclose(out, ref, atol=1e-4, rtol=1e-4), "mismatch vs reference"

    print("KERNEL_OK")
</pallas_src>

<mosaic_0001>
module attributes {stable_mosaic.version = 11 : i64} {
  func.func @_fused_mlp_kernel(%arg0: i32, %arg1: memref<2xf32, #tpu.memory_space<smem>>, %arg2: memref<8x128xf32, #tpu.memory_space<vmem>>, %arg3: memref<128x128xf32, #tpu.memory_space<vmem>>, %arg4: memref<1x128xf32, #tpu.memory_space<vmem>>, %arg5: memref<128x128xf32, #tpu.memory_space<vmem>>, %arg6: memref<1x128xf32, #tpu.memory_space<vmem>>, %arg7: memref<8x128xf32, #tpu.memory_space<vmem>>) attributes {dimension_semantics = [#tpu.dimension_semantics<parallel>], iteration_bounds = array<i64: 1>, scalar_prefetch = 0 : i64, scratch_operands = 0 : i64, tpu.core_type = #tpu.core_type<tc>, window_params = [{transform_indices = @transform_0, window_bounds = array<i64: 2>}, {transform_indices = @transform_1, window_bounds = array<i64: 8, 128>}, {pipeline_mode = #tpu.pipeline_mode<synchronous>, transform_indices = @transform_2, window_bounds = array<i64: 128, 128>}, {pipeline_mode = #tpu.pipeline_mode<synchronous>, transform_indices = @transform_3, window_bounds = array<i64: 1, 128>}, {pipeline_mode = #tpu.pipeline_mode<synchronous>, transform_indices = @transform_4, window_bounds = array<i64: 128, 128>}, {pipeline_mode = #tpu.pipeline_mode<synchronous>, transform_indices = @transform_5, window_bounds = array<i64: 1, 128>}, {transform_indices = @transform_6, window_bounds = array<i64: 8, 128>}]} {
    %c0 = arith.constant 0 : index
    %c0_0 = arith.constant 0 : index
    %0 = vector.load %arg2[%c0, %c0_0] : memref<8x128xf32, #tpu.memory_space<vmem>>, vector<8x128xf32>
    %c0_1 = arith.constant 0 : index
    %c0_2 = arith.constant 0 : index
    %1 = vector.load %arg3[%c0_1, %c0_2] : memref<128x128xf32, #tpu.memory_space<vmem>>, vector<128x128xf32>
    %c0_3 = arith.constant 0 : index
    %c0_4 = arith.constant 0 : index
    %2 = vector.load %arg4[%c0_3, %c0_4] : memref<1x128xf32, #tpu.memory_space<vmem>>, vector<1x128xf32>
    %cst = arith.constant dense<0.000000e+00> : vector<8x128xf32>
    %3 = tpu.matmul %0, %1, %cst {dimension_numbers = #tpu.dot_dimension_numbers<[1], [0], [0], [1], [0, 0, 1, 1], [], []>} : vector<8x128xf32>, vector<128x128xf32>, vector<8x128xf32> -> vector<8x128xf32>
    %c0_5 = arith.constant 0 : index
    %4 = memref.load %arg1[%c0_5] : memref<2xf32, #tpu.memory_space<smem>>
    %5 = vector.broadcast %4 : f32 to vector<8x128xf32>
    %6 = arith.mulf %3, %5 : vector<8x128xf32>
    %7 = vector.broadcast %2 : vector<1x128xf32> to vector<8x128xf32>
    %8 = arith.addf %6, %7 : vector<8x128xf32>
    %cst_6 = arith.constant 0.000000e+00 : f32
    %9 = vector.broadcast %cst_6 : f32 to vector<8x128xf32>
    %10 = arith.maximumf %8, %9 : vector<8x128xf32>
    %c0_7 = arith.constant 0 : index
    %c0_8 = arith.constant 0 : index
    %11 = vector.load %arg5[%c0_7, %c0_8] : memref<128x128xf32, #tpu.memory_space<vmem>>, vector<128x128xf32>
    %c0_9 = arith.constant 0 : index
    %c0_10 = arith.constant 0 : index
    %12 = vector.load %arg6[%c0_9, %c0_10] : memref<1x128xf32, #tpu.memory_space<vmem>>, vector<1x128xf32>
    %cst_11 = arith.constant dense<0.000000e+00> : vector<8x128xf32>
    %13 = tpu.matmul %10, %11, %cst_11 {dimension_numbers = #tpu.dot_dimension_numbers<[1], [0], [0], [1], [0, 0, 1, 1], [], []>} : vector<8x128xf32>, vector<128x128xf32>, vector<8x128xf32> -> vector<8x128xf32>
    %c1 = arith.constant 1 : index
    %14 = memref.load %arg1[%c1] : memref<2xf32, #tpu.memory_space<smem>>
    %15 = vector.broadcast %14 : f32 to vector<8x128xf32>
    %16 = arith.mulf %13, %15 : vector<8x128xf32>
    %17 = vector.broadcast %12 : vector<1x128xf32> to vector<8x128xf32>
    %18 = arith.addf %16, %17 : vector<8x128xf32>
    %cst_12 = arith.constant 0.000000e+00 : f32
    %19 = vector.broadcast %cst_12 : f32 to vector<8x128xf32>
    %20 = arith.maximumf %18, %19 : vector<8x128xf32>
    %c0_13 = arith.constant 0 : index
    %c0_14 = arith.constant 0 : index
    %21 = vector.load %arg7[%c0_13, %c0_14] : memref<8x128xf32, #tpu.memory_space<vmem>>, vector<8x128xf32>
    tpu.vector_store %arg7[%c0_13, %c0_14], %20 {strides = array<i32>} : memref<8x128xf32, #tpu.memory_space<vmem>>, vector<8x128xf32>,
    return
  }
  func.func @transform_0(%arg0: i32) -> i32 {
    %c0_i32 = arith.constant 0 : i32
    %c0_i32_0 = arith.constant 0 : i32
    return %c0_i32 : i32
  }
  func.func @transform_1(%arg0: i32) -> (i32, i32) {
    %c0_i32 = arith.constant 0 : i32
    %c0_i32_0 = arith.constant 0 : i32
    return %arg0, %c0_i32 : i32, i32
  }
  func.func @transform_2(%arg0: i32) -> (i32, i32) {
    %c0_i32 = arith.constant 0 : i32
    %c0_i32_0 = arith.constant 0 : i32
    %c0_i32_1 = arith.constant 0 : i32
    return %c0_i32, %c0_i32_0 : i32, i32
  }
  func.func @transform_3(%arg0: i32) -> (i32, i32) {
    %c0_i32 = arith.constant 0 : i32
    %c0_i32_0 = arith.constant 0 : i32
    %c0_i32_1 = arith.constant 0 : i32
    return %c0_i32, %c0_i32_0 : i32, i32
  }
  func.func @transform_4(%arg0: i32) -> (i32, i32) {
    %c0_i32 = arith.constant 0 : i32
    %c0_i32_0 = arith.constant 0 : i32
    %c0_i32_1 = arith.constant 0 : i32
    return %c0_i32, %c0_i32_0 : i32, i32
  }
  func.func @transform_5(%arg0: i32) -> (i32, i32) {
    %c0_i32 = arith.constant 0 : i32
    %c0_i32_0 = arith.constant 0 : i32
    %c0_i32_1 = arith.constant 0 : i32
    return %c0_i32, %c0_i32_0 : i32, i32
  }
  func.func @transform_6(%arg0: i32) -> (i32, i32) {
    %c0_i32 = arith.constant 0 : i32
    %c0_i32_0 = arith.constant 0 : i32
    return %arg0, %c0_i32 : i32, i32
  }
}

</mosaic_0001>

<bundles_post_ra>
// kernel: tpu_custom_call.1
= control target key start
LH: loop header
LB: loop body
LE: loop exit
PB: predicated region body
PF: predicated region fallthrough
CT: control target
= control target key end

     0   :  { %11 = vsyncpa [#allocation5], 0  ;;  %s600_s0 = inlined_call_operand.hbm [shape: f32[2], index: 0, kind: input, shape index: {}]   ;;  %s601_s1 = inlined_call_operand.hbm [shape: f32[8,128], index: 1, kind: input, shape index: {}]   ;;  %s602_s2 = inlined_call_operand.hbm [shape: f32[128,128], index: 2, kind: input, shape index: {}]   ;;  %s603_s3 = inlined_call_operand.vmem [shape: f32[1,128], index: 3, kind: input, shape index: {}]   ;;  %s604_s4 = inlined_call_operand.hbm [shape: f32[128,128], index: 4, kind: input, shape index: {}]   ;;  %s605_s5 = inlined_call_operand.vmem [shape: f32[1,128], index: 5, kind: input, shape index: {}]   ;;  %s606_s6 = inlined_call_operand.hbm [shape: f32[8,128], index: 6, kind: output, shape index: {}]  }
   0x1   :  { %12 = vsyncpa [#allocation3], 0 }
   0x2   :  { %13 = vsyncpa [#allocation8], 0 }
   0x3   :  { %14 = vsyncpa [#allocation4], 0  ;;  %s501_s21 = smov [#allocation7]  }
   0x4   :  { %s38_s22 = sshll.u32 %s501_s21, 4  ;;  %s39_s22 = int_to_ptr.vmem [resolvable:$true] %s38_s22 }
   0x5   :  { %s413_s23 = scalar_lea.vmem %s39_s22, 2048  ;;  %p418_p1 = scmp.lt.s32.totalorder %s39_s22, %s39_s22 }
   0x6   :  { %p414_p0 = scmp.ne.s32.totalorder %s39_s22, %s413_s23  ;;  %p419_p2 = scmp.lt.s32.totalorder %s413_s23, %s413_s23 }
   0x8   :  { %p420_p3 = por %p419_p2, %p418_p1 }
   0xa   :  { %p421_p4 = pnand %p420_p3, %p414_p0 }
   0xc   :  { %424 = shalt.err (!%p421_p4)
}
   0xd   :  { %s502_s24 = smov 128   ;;  %s503_s25 = smov 8  }
   0xe   :  { %44 = dma.hbm_to_vmem [thread:$0]  %s602_s2, 2048, %s39_s22, [#allocation8], %s502_s24, %s502_s24, %s503_s25  }
   0xf   :  { %s504_s28 = smov [#allocation2]   ;;  %s505_s7 = smov [#allocation6]  }
  0x10   :  { %22 = dma.hbm_to_smem %s600_s0, 16, %s504_s28, [#allocation5]  }
  0x11   :  { %s29_s8 = sshll.u32 %s505_s7, 4  ;;  %s506_s9 = smov [#allocation9]   ;;  %s30_s8 = int_to_ptr.vmem [resolvable:$true] %s29_s8 }
  0x12   :  { %s52_s10 = sshll.u32 %s506_s9, 4  ;;  %s441_s11 = scalar_lea.vmem %s30_s8, 128  ;;  %s53_s10 = int_to_ptr.vmem [resolvable:$true] %s52_s10 }
  0x13   :  { %p442_p5 = scmp.ne.s32.totalorder %s30_s8, %s441_s11  ;;  %p446_p6 = scmp.lt.s32.totalorder %s30_s8, %s30_s8 }
  0x14   :  { %p447_p7 = scmp.lt.s32.totalorder %s441_s11, %s441_s11 }
  0x16   :  { %p448_p8 = por %p447_p7, %p446_p6 }
  0x18   :  { %p449_p9 = pnand %p448_p8, %p442_p5 }
  0x1a   :  { %452 = shalt.err (!%p449_p9)
}
  0x1b   :  { %32 = dma.hbm_to_vmem [thread:$0]  %s601_s1, 128, %s30_s8, [#allocation3]  }
  0x1c   :  { %s461_s13 = scalar_lea.vmem %s53_s10, 2048  ;;  %p466_p11 = scmp.lt.s32.totalorder %s53_s10, %s53_s10 }
  0x1d   :  { %p462_p10 = scmp.ne.s32.totalorder %s53_s10, %s461_s13  ;;  %p467_p12 = scmp.lt.s32.totalorder %s461_s13, %s461_s13 }
  0x1f   :  { %p468_p13 = por %p467_p12, %p466_p11 }
  0x21   :  { %p469_p0 = pnand %p468_p13, %p462_p10 }
  0x23   :  { %472 = shalt.err (!%p469_p0)
}
  0x24   :  { %58 = dma.hbm_to_vmem [thread:$0]  %s604_s4, 2048, %s53_s10, [#allocation8], %s502_s24, %s502_s24, %s503_s25  }
  0x25   :  { %493 = dma.done.wait [#allocation5], 16  }
  0x26   :  { %494 = vsyncadd [#allocation5], 4294967280 }
  0x27   :  { %495 = dma.done.wait [#allocation3], 128  }
  0x28   :  { %496 = vsyncadd [#allocation3], 4294967168 }
  0x29   :  { %497 = dma.done.wait [#allocation8], 4096  }
  0x2a   :  { %498 = vsyncadd [#allocation8], 4294963200 }
  0x2b   :  { %73 = sfence }
  0x2c   :  { %v90_v0 = vld [vmem:[#allocation7 + $0x78] sm:$0xff]  ;;  %v507_v1 = vmov 0.0   ;;  %v89_v2 = vld [vmem:[#allocation7 + $0x70] sm:$0xff]  ;;  %vm508_vm0 = vmmov 0   ;;  %v88_v3 = vld [vmem:[#allocation7 + $0x68] sm:$0xff]  ;;  %s162_s1 = sld [smem:[#allocation2]] }
  0x2d   :  { %326 = vmatprep.subr.mxu0 %v507_v1  ;;  %358 = vmatprep.mubr.msk.f32.mxu0 %vm508_vm0, %v507_v1  ;;  %v87_v4 = vld [vmem:[#allocation7 + $0x60] sm:$0xff]  ;;  %v188_v5 = vld [vmem:[#allocation9 + $0x78] sm:$0xff]  ;;  %v187_v6 = vld [vmem:[#allocation9 + $0x70] sm:$0xff]  ;;  %s290_s16 = sld [smem:[#allocation2 + $0x1]]  ;;  %s509_s19 = smov [#allocation10]  }
  0x2e   :  { %327 = vmatpush3.msra.mxu0 %v90_v0  ;;  %361 = vmatprep.subr.mxu1 %v507_v1  ;;  %v86_v7 = vld [vmem:[#allocation7 + $0x58] sm:$0xff]  ;;  %v186_v8 = vld [vmem:[#allocation9 + $0x68] sm:$0xff]  ;;  %v85_v9 = vld [vmem:[#allocation7 + $0x50] sm:$0xff]  ;;  %s278_s20 = sshll.u32 %s509_s19, 4  ;;  %s279_s20 = int_to_ptr.vmem [resolvable:$true] %s278_s20 }
  0x2f   :  { %328 = vmatprep.subr.mxu0 %v507_v1  ;;  %393 = vmatprep.mubr.msk.f32.mxu1 %vm508_vm0, %v507_v1  ;;  %v185_v10 = vld [vmem:[#allocation9 + $0x60] sm:$0xff]  ;;  %v84_v11 = vld [vmem:[#allocation7 + $0x48] sm:$0xff]  ;;  %v184_v12 = vld [vmem:[#allocation9 + $0x58] sm:$0xff]  ;;  %p478_p2 = scmp.lt.s32.totalorder %s279_s20, %s279_s20 }
  0x30   :  { %329 = vmatpush3.msra.mxu0 %v89_v2  ;;  %362 = vmatpush3.msra.mxu1 %v188_v5  ;;  %v83_v13 = vld [vmem:[#allocation7 + $0x40] sm:$0xff]  ;;  %v183_v14 = vld [vmem:[#allocation9 + $0x50] sm:$0xff]  ;;  %v82_v15 = vld [vmem:[#allocation7 + $0x38] sm:$0xff] }
  0x31   :  { %330 = vmatprep.subr.mxu0 %v507_v1  ;;  %363 = vmatprep.subr.mxu1 %v507_v1  ;;  %v182_v16 = vld [vmem:[#allocation9 + $0x48] sm:$0xff]  ;;  %v81_v17 = vld [vmem:[#allocation7 + $0x30] sm:$0xff]  ;;  %v181_v18 = vld [vmem:[#allocation9 + $0x40] sm:$0xff] }
  0x32   :  { %331 = vmatpush3.msra.mxu0 %v88_v3  ;;  %364 = vmatpush3.msra.mxu1 %v187_v6  ;;  %v80_v19 = vld [vmem:[#allocation7 + $0x28] sm:$0xff]  ;;  %v180_v20 = vld [vmem:[#allocation9 + $0x38] sm:$0xff]  ;;  %v79_v21 = vld [vmem:[#allocation7 + $0x20] sm:$0xff]  ;;  %v163_v34 = vstv %s162_s1 }
  0x33   :  { %332 = vmatprep.subr.mxu0 %v507_v1  ;;  %365 = vmatprep.subr.mxu1 %v507_v1  ;;  %v179_v22 = vld [vmem:[#allocation9 + $0x30] sm:$0xff]  ;;  %v78_v23 = vld [vmem:[#allocation7 + $0x18] sm:$0xff]  ;;  %v178_v24 = vld [vmem:[#allocation9 + $0x28] sm:$0xff]  ;;  %v261_v41 = vstv %s290_s16 }
  0x34   :  { %333 = vmatpush3.msra.mxu0 %v87_v4  ;;  %366 = vmatpush3.msra.mxu1 %v186_v8  ;;  %v77_v25 = vld [vmem:[#allocation7 + $0x10] sm:$0xff]  ;;  %v177_v26 = vld [vmem:[#allocation9 + $0x20] sm:$0xff]  ;;  %v76_v27 = vld [vmem:[#allocation7 + $0x8] sm:$0xff] }
  0x35   :  { %334 = vmatprep.subr.mxu0 %v507_v1  ;;  %367 = vmatprep.subr.mxu1 %v507_v1  ;;  %v75_v28 = vld [vmem:[#allocation7] sm:$0xff]  ;;  %v74_v29 = vld [vmem:[#allocation6] sm:$0xff]  ;;  %v175_v31 = vld [vmem:[#allocation9 + $0x10] sm:$0xff] }
  0x36   :  { %335 = vmatpush3.msra.mxu0 %v86_v7  ;;  %368 = vmatpush3.msra.mxu1 %v185_v10  ;;  %v176_v30 = vld [vmem:[#allocation9 + $0x18] sm:$0xff]  ;;  %v174_v32 = vld [vmem:[#allocation9 + $0x8] sm:$0xff]  ;;  %v173_v33 = vld [vmem:[#allocation9] sm:$0xff] }
  0x37   :  { %336 = vmatprep.subr.mxu0 %v507_v1  ;;  %369 = vmatprep.subr.mxu1 %v507_v1  ;;  %v289_v35 = vld [vmem:[%s603_s3] ss:$0 sm:$0xff]  ;;  %s473_s3 = scalar_lea.vmem %s279_s20, 128 }
  0x38   :  { %337 = vmatpush3.msra.mxu0 %v85_v9  ;;  %370 = vmatpush3.msra.mxu1 %v184_v12  ;;  %v291_v43 = vld [vmem:[%s605_s5] ss:$0 sm:$0xff]  ;;  %p474_p1 = scmp.ne.s32.totalorder %s279_s20, %s473_s3  ;;  %p479_p3 = scmp.lt.s32.totalorder %s473_s3, %s473_s3 }
  0x39   :  { %338 = vmatprep.subr.mxu0 %v507_v1  ;;  %371 = vmatprep.subr.mxu1 %v507_v1 }
  0x3a   :  { %339 = vmatpush3.msra.mxu0 %v84_v11  ;;  %372 = vmatpush3.msra.mxu1 %v183_v14  ;;  %p480_p4 = por %p479_p3, %p478_p2 }
  0x3b   :  { %340 = vmatprep.subr.mxu0 %v507_v1  ;;  %373 = vmatprep.subr.mxu1 %v507_v1 }
  0x3c   :  { %341 = vmatpush3.msra.mxu0 %v83_v13  ;;  %374 = vmatpush3.msra.mxu1 %v182_v16  ;;  %p481_p5 = pnand %p480_p4, %p474_p1 }
  0x3d   :  { %342 = vmatprep.subr.mxu0 %v507_v1  ;;  %375 = vmatprep.subr.mxu1 %v507_v1 }
  0x3e   :  { %343 = vmatpush3.msra.mxu0 %v82_v15  ;;  %376 = vmatpush3.msra.mxu1 %v181_v18 }
  0x3f   :  { %344 = vmatprep.subr.mxu0 %v507_v1  ;;  %377 = vmatprep.subr.mxu1 %v507_v1 }
  0x40   :  { %345 = vmatpush3.msra.mxu0 %v81_v17  ;;  %378 = vmatpush3.msra.mxu1 %v180_v20 }
  0x41   :  { %346 = vmatprep.subr.mxu0 %v507_v1  ;;  %379 = vmatprep.subr.mxu1 %v507_v1 }
  0x42   :  { %347 = vmatpush3.msra.mxu0 %v80_v19  ;;  %380 = vmatpush3.msra.mxu1 %v179_v22 }
  0x43   :  { %348 = vmatprep.subr.mxu0 %v507_v1  ;;  %381 = vmatprep.subr.mxu1 %v507_v1 }
  0x44   :  { %349 = vmatpush3.msra.mxu0 %v79_v21  ;;  %382 = vmatpush3.msra.mxu1 %v178_v24 }
  0x45   :  { %350 = vmatprep.subr.mxu0 %v507_v1  ;;  %383 = vmatprep.subr.mxu1 %v507_v1 }
  0x46   :  { %351 = vmatpush3.msra.mxu0 %v78_v23  ;;  %384 = vmatpush3.msra.mxu1 %v177_v26 }
  0x47   :  { %352 = vmatprep.subr.mxu0 %v507_v1  ;;  %385 = vmatprep.subr.mxu1 %v507_v1 }
  0x48   :  { %353 = vmatpush3.msra.mxu0 %v77_v25  ;;  %386 = vmatpush3.msra.mxu1 %v176_v30 }
  0x49   :  { %354 = vmatprep.subr.mxu0 %v507_v1  ;;  %387 = vmatprep.subr.mxu1 %v507_v1 }
  0x4a   :  { %355 = vmatpush3.msra.mxu0 %v76_v27  ;;  %388 = vmatpush3.msra.mxu1 %v175_v31 }
  0x4b   :  { %356 = vmatprep.subr.mxu0 %v507_v1  ;;  %389 = vmatprep.subr.mxu1 %v507_v1 }
  0x4c   :  { %357 = vmatpush3.msra.mxu0 %v75_v28  ;;  %390 = vmatpush3.msra.mxu1 %v174_v32 }
  0x4d   :  { %359 = vmatmul.mubr.f32.vlgmr.msra.gmra.mxu0 %v74_v29  ;;  %391 = vmatprep.subr.mxu1 %v507_v1 }
  0x4e   :  { %392 = vmatpush3.msra.mxu1 %v173_v33 }
 0x10d   :  { %v158_v36 = vpop.f32.mrf.mxu0 }
 0x10e   :  { %v164_v37 = vmul.f32 %v163_v34, %v158_v36 }
 0x10f   :  { %v360_v38 = vpop.f32.mrf.mxu0 }
 0x110   :  { %v171_v39 = vadd.f32 %v289_v35, %v164_v37 }
 0x112   :  { %v172_v40 = vmax.f32 %v171_v39, 0.0 }
 0x114   :  { %394 = vmatmul.mubr.f32.vlgmr.msra.gmra.mxu1 %v172_v40 }
 0x1d4   :  { %v256_v42 = vpop.f32.mrf.mxu1 }
 0x1d5   :  { %v262_v44 = vmul.f32 %v261_v41, %v256_v42 }
 0x1d6   :  { %v395_v45 = vpop.f32.mrf.mxu1 }
 0x1d7   :  { %v269_v46 = vadd.f32 %v291_v43, %v262_v44 }
 0x1d9   :  { %v270_v47 = vmax.f32 %v269_v46, 0.0 }
 0x1db   :  { %271 = vst [vmem:[#allocation10] sm:$0xff] %v270_v47 }
 0x1dc   :  { %484 = shalt.err (!%p481_p5)
}
 0x1dd   :  { %281 = dma.vmem_to_hbm [thread:$0]  %s279_s20, 128, %s606_s6, [#allocation4]  }
 0x1de   :  { %499 = dma.done.wait [#allocation4], 128  }
 0x1df   :  { %500 = vsyncadd [#allocation4], 4294967168 }
 0x1e0   :  { %285 = vsyncpa [#allocation3], 1 }
 0x1e1   :  { %286 = vsyncpa [#allocation8], 1 }
 0x1e2   :  { %287 = vsyncpa [#allocation4], 1 }
 0x1e3   :  { %288 = vsyncpa [#allocation5], 1 }

</bundles_post_ra>
